<compile_context>
chip_gen: v7x
topology: tpu7x:2x2x1
jax: 0.10.0
libtpu: 0.0.40
codegen_flags: <defaults>
</compile_context>

<pallas_src>
import functools

import jax
import jax.numpy as jnp
from jax.experimental import pallas as pl
from jax.experimental.pallas import tpu as pltpu


# ----------------------------------------------------------------------------
# VMEM sizing helpers (generation aware, with a conservative fallback)
# ----------------------------------------------------------------------------
def _tpu_vmem_capacity_bytes(default=64 << 20):
    """Physical VMEM of the local chip (v5e/v6e 128 MiB, v7x 64 MiB per core)."""
    try:
        cap = int(pltpu.get_tpu_info().vmem_capacity_bytes)
        if cap > 0:
            return cap
    except Exception:
        pass
    return default


def _vmem_budget_and_limit():
    cap = _tpu_vmem_capacity_bytes()
    # ~1/3 of physical as kernel working-set target, raise the scoped limit to 3/4.
    return cap // 3, (cap * 3) // 4


# ----------------------------------------------------------------------------
# Fused CLIP contrastive loss:
#   out = ( sum_r lse_row(r) + sum_c lse_col(c) - 2 * sum_r L[r, r] ) / (2 * B)
#       = ( CE(L, arange) + CE(L.T, arange) ) / 2
# ----------------------------------------------------------------------------
def _clip_pair_ce_kernel(img_ref, txt_ref, txt_diag_ref, scale_ref, out_ref,
                         col_max_ref, col_sum_ref, row_acc_ref, *, n_rows):
    i = pl.program_id(0)
    nsteps = pl.num_programs(0)

    @pl.when(i == 0)
    def _():
        col_max_ref[...] = jnp.full(col_max_ref.shape, -jnp.inf, jnp.float32)
        col_sum_ref[...] = jnp.zeros(col_sum_ref.shape, jnp.float32)
        row_acc_ref[...] = jnp.zeros(row_acc_ref.shape, jnp.float32)
        out_ref[...] = jnp.zeros(out_ref.shape, jnp.float32)

    scale = scale_ref[0, 0]                               # SMEM scalar

    rows = img_ref[...]                                   # (TB, F), bf16-native
    TB = rows.shape[0]
    # Fold logit_scale into the small (TB, F) operand instead of the (TB, B) logits.
    rows = (rows.astype(jnp.float32) * scale).astype(rows.dtype)
    cols = txt_ref[...]                                   # (B, F), resident block

    # bf16 x bf16 -> f32 on the MXU (no operand upcast to f32).
    logits = jax.lax.dot_general(
        rows, cols,
        dimension_numbers=(((1,), (1,)), ((), ())),
        preferred_element_type=jnp.float32)               # (TB, B)

    row_gid = jax.lax.broadcasted_iota(jnp.int32, (TB, 1), 0) + i * TB
    row_valid = row_gid < n_rows                          # (TB, 1) bool

    # --- image->text direction: row-wise logsumexp of this tile -------------
    m_row = jnp.max(logits, axis=-1, keepdims=True)
    lse_row = m_row + jnp.log(jnp.sum(jnp.exp(logits - m_row), axis=-1, keepdims=True))

    # Diagonal pick without a (TB, B) one-hot: L[r, r] = scale * img[r] . txt[r],
    # computed from the matching (TB, F) text tile (O(TB*F) work).
    picked = jnp.sum(rows.astype(jnp.float32) * txt_diag_ref[...].astype(jnp.float32),
                     axis=-1, keepdims=True)              # (TB, 1)

    # Per-row contribution for BOTH directions.  select (not multiply-by-0) keeps
    # NaN/Inf from garbage padded tail rows out of the accumulator.
    row_acc_ref[...] += jnp.where(row_valid, lse_row - 2.0 * picked, 0.0)

    # --- text->image direction: online column-wise logsumexp ----------------
    # (reuses the same logits tile, so no second B x B x F matmul).
    if n_rows % TB != 0:
        # Only materialize the full-tile mask when a padded tail tile exists.
        logits_c = jnp.where(row_valid, logits, -jnp.inf)
    else:
        logits_c = logits
    m_tile = jnp.max(logits_c, axis=0, keepdims=True)     # (1, B)
    m_new = jnp.maximum(col_max_ref[...], m_tile)
    col_sum_ref[...] = (col_sum_ref[...] * jnp.exp(col_max_ref[...] - m_new)
                        + jnp.sum(jnp.exp(logits_c - m_new), axis=0, keepdims=True))
    col_max_ref[...] = m_new

    @pl.when(i == nsteps - 1)
    def _():
        col_lse = col_max_ref[...] + jnp.log(col_sum_ref[...])      # (1, B)
        total = (jnp.sum(row_acc_ref[...], keepdims=True)
                 + jnp.sum(col_lse, keepdims=True))                 # (1, 1)
        out_ref[...] = total / (2.0 * n_rows)


def _pick_clip_tile(n_rows, feat_dim, feat_itemsize, max_rows, budget_bytes):
    # Per-step VMEM accounting (conservative, counts pipeline double buffers):
    #   image tile + diag text tile (2 bufs each): 4 * TB * F * itemsize
    #   resident full text block (2 bufs):         2 * B * F * itemsize
    #   f32 logits + masked copy + exp temps:      ~3 * TB * B * 4
    #   scratch (col max/sum, row acc):            ~2 * B * 4 + TB * 4
    fixed = 2 * n_rows * feat_dim * feat_itemsize + 2 * n_rows * 4
    per_row = 4 * feat_dim * feat_itemsize + 3 * n_rows * 4 + 4
    avail = max(budget_bytes - fixed, 8 * per_row)
    t = min(int(max_rows), int(avail // per_row))
    t = max(8, (t // 8) * 8)
    return n_rows if n_rows <= t else t


def clip_contrastive_loss(image_features, text_features, logit_scale, *, max_tile_rows=256):
    """(CE(L, arange) + CE(L.T, arange)) / 2 for L = scale * img @ txt.T, as a scalar."""
    B, F = image_features.shape
    assert text_features.shape == (B, F)
    feat_item = jnp.dtype(image_features.dtype).itemsize
    budget, vmem_limit = _vmem_budget_and_limit()
    TB = _pick_clip_tile(B, F, feat_item, max_tile_rows, budget)
    grid = (pl.cdiv(B, TB),)

    scale2d = jnp.asarray(logit_scale, jnp.float32).reshape(1, 1)

    cost = pl.CostEstimate(
        flops=int(2 * B * B * F + 2 * B * F + 10 * B * B),
        transcendentals=int(2 * B * B + 2 * B),
        bytes_accessed=int(feat_item * 3 * B * F + 8),
    )

    kernel = functools.partial(_clip_pair_ce_kernel, n_rows=B)
    out = pl.pallas_call(
        kernel,
        out_shape=jax.ShapeDtypeStruct((1, 1), jnp.float32),
        grid_spec=pltpu.PrefetchScalarGridSpec(
            num_scalar_prefetch=0,
            grid=grid,
            in_specs=[
                pl.BlockSpec((TB, F), lambda i: (i, 0)),     # image row tile (streamed)
                pl.BlockSpec((B, F), lambda i: (0, 0)),      # full text features (resident)
                pl.BlockSpec((TB, F), lambda i: (i, 0)),     # matching text rows (diag pick)
                pl.BlockSpec(memory_space=pltpu.MemorySpace.SMEM),  # logit_scale scalar
            ],
            out_specs=pl.BlockSpec((1, 1), lambda i: (0, 0)),  # resident scalar output
            scratch_shapes=[
                pltpu.VMEM((1, B), jnp.float32),   # running column max
                pltpu.VMEM((1, B), jnp.float32),   # running column sum-exp
                pltpu.VMEM((TB, 1), jnp.float32),  # per-row (lse - 2*diag) accumulator
            ],
        ),
        compiler_params=pltpu.CompilerParams(
            dimension_semantics=("arbitrary",),
            vmem_limit_bytes=int(vmem_limit),
        ),
        cost_estimate=cost,
    )(image_features, text_features, text_features, scale2d)
    return out[0, 0]


# ----------------------------------------------------------------------------
# Caption cross-entropy with ignore_index (token-tiled over B*T, vocab on lanes)
# ----------------------------------------------------------------------------
def _caption_ce_kernel(logits_ref, labels_ref, out_ref, loss_acc_ref, cnt_acc_ref,
                       *, pad_id, n_rows):
    i = pl.program_id(0)
    nsteps = pl.num_programs(0)

    @pl.when(i == 0)
    def _():
        loss_acc_ref[...] = jnp.zeros(loss_acc_ref.shape, jnp.float32)
        cnt_acc_ref[...] = jnp.zeros(cnt_acc_ref.shape, jnp.float32)
        out_ref[...] = jnp.zeros(out_ref.shape, jnp.float32)

    logits = logits_ref[...].astype(jnp.float32)          # (TT, V), f32 math
    labels = labels_ref[...]                              # (TT, 1) int32
    TT, V = logits.shape

    gid = jax.lax.broadcasted_iota(jnp.int32, (TT, 1), 0) + i * TT
    valid = jnp.logical_and(gid < n_rows, labels != pad_id)   # (TT, 1) bool

    m = jnp.max(logits, axis=-1, keepdims=True)
    lse = m + jnp.log(jnp.sum(jnp.exp(logits - m), axis=-1, keepdims=True))   # (TT, 1)

    vocab_ids = jax.lax.broadcasted_iota(jnp.int32, (TT, V), 1)
    picked = jnp.sum(jnp.where(vocab_ids == labels, logits, 0.0),
                     axis=-1, keepdims=True)                                  # (TT, 1)

    # select (not multiply) keeps NaN from garbage tail rows out of the sums.
    loss_acc_ref[...] += jnp.where(valid, lse - picked, 0.0)
    cnt_acc_ref[...] += jnp.where(valid, 1.0, 0.0)

    @pl.when(i == nsteps - 1)
    def _():
        out_ref[...] = (jnp.sum(loss_acc_ref[...], keepdims=True)
                        / jnp.sum(cnt_acc_ref[...], keepdims=True))


def _pick_caption_tile(n_rows, vocab, itemsize, max_rows, budget_bytes):
    # 2 bufs of the (TT, V) logits block + ~2 f32-sized temporaries (cast + exp),
    # plus labels blocks and the two (TT, 1) accumulators.
    per_row = vocab * (2 * itemsize + 8) + 2 * 4 + 12
    t = min(int(max_rows), int(max(budget_bytes // per_row, 8)))
    t = max(8, (t // 8) * 8)
    return n_rows if n_rows <= t else t


def caption_cross_entropy(cap_logits, cap_labels, pad_id, *, max_tile_rows=512):
    """F.cross_entropy(logits.permute(0,2,1), labels, ignore_index=pad_id) as a scalar."""
    Bc, T, V = cap_logits.shape
    N = Bc * T
    flat_logits = cap_logits.reshape(N, V)
    flat_labels = cap_labels.astype(jnp.int32).reshape(N, 1)

    itemsize = jnp.dtype(cap_logits.dtype).itemsize
    budget, vmem_limit = _vmem_budget_and_limit()
    TT = _pick_caption_tile(N, V, itemsize, max_tile_rows, budget)
    grid = (pl.cdiv(N, TT),)

    cost = pl.CostEstimate(
        flops=int(8 * N * V),
        transcendentals=int(N * V),
        bytes_accessed=int(N * V * itemsize + N * 4 + 4),
    )

    kernel = functools.partial(_caption_ce_kernel, pad_id=int(pad_id), n_rows=N)
    out = pl.pallas_call(
        kernel,
        out_shape=jax.ShapeDtypeStruct((1, 1), jnp.float32),
        grid_spec=pltpu.PrefetchScalarGridSpec(
            num_scalar_prefetch=0,
            grid=grid,
            in_specs=[
                pl.BlockSpec((TT, V), lambda i: (i, 0)),   # token tile of vocab logits
                pl.BlockSpec((TT, 1), lambda i: (i, 0)),   # matching labels
            ],
            out_specs=pl.BlockSpec((1, 1), lambda i: (0, 0)),
            scratch_shapes=[
                pltpu.VMEM((TT, 1), jnp.float32),   # per-token loss accumulator
                pltpu.VMEM((TT, 1), jnp.float32),   # valid-token count accumulator
            ],
        ),
        compiler_params=pltpu.CompilerParams(
            dimension_semantics=("arbitrary",),
            vmem_limit_bytes=int(vmem_limit),
        ),
        cost_estimate=cost,
    )(flat_logits, flat_labels)
    return out[0, 0]


# ----------------------------------------------------------------------------
# CoCaLoss.forward (world_size == 1)
# ----------------------------------------------------------------------------
def coca_loss(image_features, text_features, cap_logits, cap_labels, logit_scale,
              *, caption_loss_weight, clip_loss_weight, pad_id=0,
              clip_tile_rows=256, caption_tile_rows=512,
              compute_dtype=jnp.bfloat16):
    """Returns (clip_loss, caption_loss).

    compute_dtype: dtype the feature matrices / caption logits are cast to before
    the kernels (bf16 feeds the MXU natively and halves HBM traffic; the in-kernel
    softmax math is always f32).  Pass None to keep the input dtype.
    """
    if compute_dtype is not None:
        image_features = image_features.astype(compute_dtype)
        text_features = text_features.astype(compute_dtype)
        cap_logits = cap_logits.astype(compute_dtype)

    if clip_loss_weight:
        contrastive = clip_contrastive_loss(
            image_features, text_features, logit_scale, max_tile_rows=clip_tile_rows)
        clip_loss = clip_loss_weight * contrastive
    else:
        clip_loss = jnp.float32(0.0)

    caption_loss = caption_loss_weight * caption_cross_entropy(
        cap_logits, cap_labels, pad_id, max_tile_rows=caption_tile_rows)
    return clip_loss, caption_loss


# ----------------------------------------------------------------------------
# Pure-JAX f32 reference (mirrors the PyTorch module)
# ----------------------------------------------------------------------------
def _coca_loss_ref(image_features, text_features, cap_logits, cap_labels, logit_scale,
                   caption_loss_weight, clip_loss_weight, pad_id):
    imf = image_features.astype(jnp.float32)
    txf = text_features.astype(jnp.float32)
    B = imf.shape[0]
    lpi = logit_scale * (imf @ txf.T)
    lpt = logit_scale * (txf @ imf.T)
    labels = jnp.arange(B)

    def ce(logits, lab):
        lse = jax.nn.logsumexp(logits, axis=-1)
        picked = jnp.take_along_axis(logits, lab[:, None], axis=-1)[:, 0]
        return jnp.mean(lse - picked)

    clip_loss = clip_loss_weight * (ce(lpi, labels) + ce(lpt, labels)) / 2

    V = cap_logits.shape[-1]
    fl = cap_logits.astype(jnp.float32).reshape(-1, V)
    ll = cap_labels.reshape(-1)
    lse = jax.nn.logsumexp(fl, axis=-1)
    picked = jnp.take_along_axis(fl, ll[:, None], axis=-1)[:, 0]
    mask = (ll != pad_id).astype(jnp.float32)
    caption = caption_loss_weight * jnp.sum((lse - picked) * mask) / jnp.sum(mask)
    return clip_loss, caption


if __name__ == "__main__":
    key = jax.random.PRNGKey(0)
    k1, k2, k3, k4 = jax.random.split(key, 4)

    # CLIP branch: B deliberately not a multiple of the row tile to exercise the
    # padded tail-tile paths (row select + column -inf mask + tail diag pick).
    B, F = 12, 128
    image_features = jax.random.normal(k1, (B, F), dtype=jnp.float32)
    text_features = jax.random.normal(k2, (B, F), dtype=jnp.float32)
    image_features = image_features / jnp.linalg.norm(image_features, axis=-1, keepdims=True)
    text_features = text_features / jnp.linalg.norm(text_features, axis=-1, keepdims=True)
    logit_scale = jnp.float32(5.0)

    # Caption branch: (B_cap, T, V) logits + labels with some pad tokens;
    # B_cap*T = 70 is not a multiple of the 32-token tile either.
    B_cap, T, V = 2, 35, 256
    cap_logits = jax.random.normal(k3, (B_cap, T, V), dtype=jnp.float32)
    cap_labels = jax.random.randint(k4, (B_cap, T), 1, V, dtype=jnp.int32)
    pad_id = 0
    cap_labels = cap_labels.at[:, -3:].set(pad_id)   # ignored positions

    caption_loss_weight = 2.0
    clip_loss_weight = 1.0

    clip_l, cap_l = coca_loss(
        image_features, text_features, cap_logits, cap_labels, logit_scale,
        caption_loss_weight=caption_loss_weight,
        clip_loss_weight=clip_loss_weight,
        pad_id=pad_id,
        clip_tile_rows=8,          # small tiles so the demo exercises multi-step grids
        caption_tile_rows=32,      # and the masked tail-tile paths
        compute_dtype=jnp.bfloat16,
    )
    jax.block_until_ready((clip_l, cap_l))

    ref_clip, ref_cap = _coca_loss_ref(
        image_features, text_features, cap_logits, cap_labels, logit_scale,
        caption_loss_weight, clip_loss_weight, pad_id)

    # bf16 inputs vs an f32 reference: allow ~1e-2 slack.
    assert jnp.allclose(clip_l, ref_clip, rtol=1e-2, atol=1e-2), (clip_l, ref_clip)
    assert jnp.allclose(cap_l, ref_cap, rtol=1e-2, atol=1e-2), (cap_l, ref_cap)

    print("KERNEL_OK")
</pallas_src>

<mosaic_0001>
module attributes {stable_mosaic.version = 11 : i64} {
  func.func @_clip_pair_ce_kernel(%arg0: i32, %arg1: memref<8x128xbf16, #tpu.memory_space<vmem>>, %arg2: memref<12x128xbf16, #tpu.memory_space<vmem>>, %arg3: memref<8x128xbf16, #tpu.memory_space<vmem>>, %arg4: memref<1x1xf32, #tpu.memory_space<smem>>, %arg5: memref<1x1xf32, #tpu.memory_space<vmem>>, %arg6: memref<1x12xf32, #tpu.memory_space<vmem>>, %arg7: memref<1x12xf32, #tpu.memory_space<vmem>>, %arg8: memref<8x1xf32, #tpu.memory_space<vmem>>) attributes {dimension_semantics = [#tpu.dimension_semantics<arbitrary>], iteration_bounds = array<i64: 2>, scalar_prefetch = 0 : i64, scratch_operands = 3 : i64, tpu.core_type = #tpu.core_type<tc>, window_params = [{transform_indices = @transform_0, window_bounds = array<i64: 8, 128>}, {pipeline_mode = #tpu.pipeline_mode<synchronous>, transform_indices = @transform_1, window_bounds = array<i64: 12, 128>}, {transform_indices = @transform_2, window_bounds = array<i64: 8, 128>}, {transform_indices = @transform_3, window_bounds = array<i64: 1, 1>}, {pipeline_mode = #tpu.pipeline_mode<synchronous>, transform_indices = @transform_4, window_bounds = array<i64: 1, 1>}]} {
    %c0_i32 = arith.constant 0 : i32
    %0 = arith.cmpi eq, %arg0, %c0_i32 : i32
    %1 = arith.extui %0 : i1 to i32
    %c0_i32_0 = arith.constant 0 : i32
    %2 = arith.cmpi ne, %1, %c0_i32_0 : i32
    scf.if %2 {
      %cst_31 = arith.constant 0xFF800000 : f32
      %64 = vector.broadcast %cst_31 : f32 to vector<1x12xf32>
      %c0_32 = arith.constant 0 : index
      %c0_33 = arith.constant 0 : index
      %65 = vector.load %arg6[%c0_32, %c0_33] : memref<1x12xf32, #tpu.memory_space<vmem>>, vector<1x12xf32>
      tpu.vector_store %arg6[%c0_32, %c0_33], %64 {strides = array<i32>} : memref<1x12xf32, #tpu.memory_space<vmem>>, vector<1x12xf32>,
      %cst_34 = arith.constant 0.000000e+00 : f32
      %66 = vector.broadcast %cst_34 : f32 to vector<1x12xf32>
      %c0_35 = arith.constant 0 : index
      %c0_36 = arith.constant 0 : index
      %67 = vector.load %arg7[%c0_35, %c0_36] : memref<1x12xf32, #tpu.memory_space<vmem>>, vector<1x12xf32>
      tpu.vector_store %arg7[%c0_35, %c0_36], %66 {strides = array<i32>} : memref<1x12xf32, #tpu.memory_space<vmem>>, vector<1x12xf32>,
      %cst_37 = arith.constant 0.000000e+00 : f32
      %68 = vector.broadcast %cst_37 : f32 to vector<8x1xf32>
      %c0_38 = arith.constant 0 : index
      %c0_39 = arith.constant 0 : index
      %69 = vector.load %arg8[%c0_38, %c0_39] : memref<8x1xf32, #tpu.memory_space<vmem>>, vector<8x1xf32>
      tpu.vector_store %arg8[%c0_38, %c0_39], %68 {strides = array<i32>} : memref<8x1xf32, #tpu.memory_space<vmem>>, vector<8x1xf32>,
      %cst_40 = arith.constant 0.000000e+00 : f32
      %70 = vector.broadcast %cst_40 : f32 to vector<1x1xf32>
      %c0_41 = arith.constant 0 : index
      %c0_42 = arith.constant 0 : index
      %71 = vector.load %arg5[%c0_41, %c0_42] : memref<1x1xf32, #tpu.memory_space<vmem>>, vector<1x1xf32>
      tpu.vector_store %arg5[%c0_41, %c0_42], %70 {strides = array<i32>} : memref<1x1xf32, #tpu.memory_space<vmem>>, vector<1x1xf32>,
    } else {
    }
    %c0 = arith.constant 0 : index
    %c0_1 = arith.constant 0 : index
    %3 = memref.load %arg4[%c0, %c0_1] : memref<1x1xf32, #tpu.memory_space<smem>>
    %c0_2 = arith.constant 0 : index
    %c0_3 = arith.constant 0 : index
    %4 = vector.load %arg1[%c0_2, %c0_3] : memref<8x128xbf16, #tpu.memory_space<vmem>>, vector<8x128xbf16>
    %5 = arith.extf %4 : vector<8x128xbf16> to vector<8x128xf32>
    %6 = vector.broadcast %3 : f32 to vector<8x128xf32>
    %7 = arith.mulf %5, %6 : vector<8x128xf32>
    %8 = arith.truncf %7 : vector<8x128xf32> to vector<8x128xbf16>
    %c0_4 = arith.constant 0 : index
    %c0_5 = arith.constant 0 : index
    %9 = vector.load %arg2[%c0_4, %c0_5] : memref<12x128xbf16, #tpu.memory_space<vmem>>, vector<12x128xbf16>
    %cst = arith.constant dense<0.000000e+00> : vector<8x12xf32>
    %10 = tpu.matmul %8, %9, %cst {dimension_numbers = #tpu.dot_dimension_numbers<[1], [1], [0], [0], [0, 0, 1, 0], [], []>} : vector<8x128xbf16>, vector<12x128xbf16>, vector<8x12xf32> -> vector<8x12xf32>
    %11 = tpu.iota {dimensions = array<i32: 0>} : vector<8x1xi32>
    %c8_i32 = arith.constant 8 : i32
    %12 = arith.muli %arg0, %c8_i32 : i32
    %13 = vector.broadcast %12 : i32 to vector<8x1xi32>
    %14 = arith.addi %11, %13 : vector<8x1xi32>
    %c12_i32 = arith.constant 12 : i32
    %15 = vector.broadcast %c12_i32 : i32 to vector<8x1xi32>
    %16 = arith.cmpi slt, %14, %15 : vector<8x1xi32>
    %cst_6 = arith.constant dense<0xFF800000> : vector<8xf32>
    %17 = vector.multi_reduction <maximumf>, %10, %cst_6 [1] : vector<8x12xf32> to vector<8xf32>
    %18 = vector.shape_cast %17 : vector<8xf32> to vector<8x1xf32>
    %19 = vector.broadcast %18 : vector<8x1xf32> to vector<8x12xf32>
    %20 = arith.subf %10, %19 : vector<8x12xf32>
    %21 = math.exp %20 : vector<8x12xf32>
    %cst_7 = arith.constant dense<0.000000e+00> : vector<8xf32>
    %22 = vector.multi_reduction <add>, %21, %cst_7 [1] : vector<8x12xf32> to vector<8xf32>
    %23 = vector.shape_cast %22 : vector<8xf32> to vector<8x1xf32>
    %24 = math.log %23 : vector<8x1xf32>
    %25 = arith.addf %18, %24 : vector<8x1xf32>
    %26 = arith.extf %8 : vector<8x128xbf16> to vector<8x128xf32>
    %c0_8 = arith.constant 0 : index
    %c0_9 = arith.constant 0 : index
    %27 = vector.load %arg3[%c0_8, %c0_9] : memref<8x128xbf16, #tpu.memory_space<vmem>>, vector<8x128xbf16>
    %28 = arith.extf %27 : vector<8x128xbf16> to vector<8x128xf32>
    %29 = arith.mulf %26, %28 : vector<8x128xf32>
    %cst_10 = arith.constant dense<0.000000e+00> : vector<8xf32>
    %30 = vector.multi_reduction <add>, %29, %cst_10 [1] : vector<8x128xf32> to vector<8xf32>
    %31 = vector.shape_cast %30 : vector<8xf32> to vector<8x1xf32>
    %c0_11 = arith.constant 0 : index
    %c0_12 = arith.constant 0 : index
    %32 = vector.load %arg8[%c0_11, %c0_12] : memref<8x1xf32, #tpu.memory_space<vmem>>, vector<8x1xf32>
    %cst_13 = arith.constant 2.000000e+00 : f32
    %33 = vector.broadcast %cst_13 : f32 to vector<8x1xf32>
    %34 = arith.mulf %33, %31 : vector<8x1xf32>
    %35 = arith.subf %25, %34 : vector<8x1xf32>
    %cst_14 = arith.constant 0.000000e+00 : f32
    %36 = vector.broadcast %cst_14 : f32 to vector<8x1xf32>
    %37 = arith.select %16, %35, %36 : vector<8x1xi1>, vector<8x1xf32>
    %38 = arith.addf %32, %37 : vector<8x1xf32>
    %c0_15 = arith.constant 0 : index
    %c0_16 = arith.constant 0 : index
    %39 = vector.load %arg8[%c0_15, %c0_16] : memref<8x1xf32, #tpu.memory_space<vmem>>, vector<8x1xf32>
    tpu.vector_store %arg8[%c0_15, %c0_16], %38 {strides = array<i32>} : memref<8x1xf32, #tpu.memory_space<vmem>>, vector<8x1xf32>,
    %cst_17 = arith.constant 0xFF800000 : f32
    %40 = vector.shape_cast %16 : vector<8x1xi1> to vector<8x1xi1>
    %41 = vector.broadcast %40 : vector<8x1xi1> to vector<8x12xi1>
    %42 = vector.broadcast %cst_17 : f32 to vector<8x12xf32>
    %43 = arith.select %41, %10, %42 : vector<8x12xi1>, vector<8x12xf32>
    %cst_18 = arith.constant dense<0xFF800000> : vector<12xf32>
    %44 = vector.multi_reduction <maximumf>, %43, %cst_18 [0] : vector<8x12xf32> to vector<12xf32>
    %45 = vector.shape_cast %44 : vector<12xf32> to vector<1x12xf32>
    %c0_19 = arith.constant 0 : index
    %c0_20 = arith.constant 0 : index
    %46 = vector.load %arg6[%c0_19, %c0_20] : memref<1x12xf32, #tpu.memory_space<vmem>>, vector<1x12xf32>
    %47 = arith.maximumf %46, %45 : vector<1x12xf32>
    %c0_21 = arith.constant 0 : index
    %c0_22 = arith.constant 0 : index
    %48 = vector.load %arg7[%c0_21, %c0_22] : memref<1x12xf32, #tpu.memory_space<vmem>>, vector<1x12xf32>
    %c0_23 = arith.constant 0 : index
    %c0_24 = arith.constant 0 : index
    %49 = vector.load %arg6[%c0_23, %c0_24] : memref<1x12xf32, #tpu.memory_space<vmem>>, vector<1x12xf32>
    %50 = arith.subf %49, %47 : vector<1x12xf32>
    %51 = math.exp %50 : vector<1x12xf32>
    %52 = arith.mulf %48, %51 : vector<1x12xf32>
    %53 = vector.broadcast %47 : vector<1x12xf32> to vector<8x12xf32>
    %54 = arith.subf %43, %53 : vector<8x12xf32>
    %55 = math.exp %54 : vector<8x12xf32>
    %cst_25 = arith.constant dense<0.000000e+00> : vector<12xf32>
    %56 = vector.multi_reduction <add>, %55, %cst_25 [0] : vector<8x12xf32> to vector<12xf32>
    %57 = vector.shape_cast %56 : vector<12xf32> to vector<1x12xf32>
    %58 = arith.addf %52, %57 : vector<1x12xf32>
    %c0_26 = arith.constant 0 : index
    %c0_27 = arith.constant 0 : index
    %59 = vector.load %arg7[%c0_26, %c0_27] : memref<1x12xf32, #tpu.memory_space<vmem>>, vector<1x12xf32>
    tpu.vector_store %arg7[%c0_26, %c0_27], %58 {strides = array<i32>} : memref<1x12xf32, #tpu.memory_space<vmem>>, vector<1x12xf32>,
    %c0_28 = arith.constant 0 : index
    %c0_29 = arith.constant 0 : index
    %60 = vector.load %arg6[%c0_28, %c0_29] : memref<1x12xf32, #tpu.memory_space<vmem>>, vector<1x12xf32>
    tpu.vector_store %arg6[%c0_28, %c0_29], %47 {strides = array<i32>} : memref<1x12xf32, #tpu.memory_space<vmem>>, vector<1x12xf32>,
    %c1_i32 = arith.constant 1 : i32
    %61 = arith.cmpi eq, %arg0, %c1_i32 : i32
    %62 = arith.extui %61 : i1 to i32
    %c0_i32_30 = arith.constant 0 : i32
    %63 = arith.cmpi ne, %62, %c0_i32_30 : i32
    scf.if %63 {
      %c0_31 = arith.constant 0 : index
      %c0_32 = arith.constant 0 : index
      %64 = vector.load %arg6[%c0_31, %c0_32] : memref<1x12xf32, #tpu.memory_space<vmem>>, vector<1x12xf32>
      %c0_33 = arith.constant 0 : index
      %c0_34 = arith.constant 0 : index
      %65 = vector.load %arg7[%c0_33, %c0_34] : memref<1x12xf32, #tpu.memory_space<vmem>>, vector<1x12xf32>
      %66 = math.log %65 : vector<1x12xf32>
      %67 = arith.addf %64, %66 : vector<1x12xf32>
      %c0_35 = arith.constant 0 : index
      %c0_36 = arith.constant 0 : index
      %68 = vector.load %arg8[%c0_35, %c0_36] : memref<8x1xf32, #tpu.memory_space<vmem>>, vector<8x1xf32>
      %69 = vector.shape_cast %68 : vector<8x1xf32> to vector<1x8x1xf32>
      %cst_37 = arith.constant dense<0.000000e+00> : vector<1xf32>
      %70 = vector.multi_reduction <add>, %69, %cst_37 [1, 2] : vector<1x8x1xf32> to vector<1xf32>
      %71 = vector.shape_cast %70 : vector<1xf32> to vector<1x1x1xf32>
      %72 = vector.extract %71[0, 0, 0] : f32 from vector<1x1x1xf32>
      %73 = vector.broadcast %72 : f32 to vector<1x1xf32>
      %74 = vector.shape_cast %67 : vector<1x12xf32> to vector<1x1x12xf32>
      %cst_38 = arith.constant dense<0.000000e+00> : vector<1xf32>
      %75 = vector.multi_reduction <add>, %74, %cst_38 [1, 2] : vector<1x1x12xf32> to vector<1xf32>
      %76 = vector.shape_cast %75 : vector<1xf32> to vector<1x1x1xf32>
      %77 = vector.extract %76[0, 0, 0] : f32 from vector<1x1x1xf32>
      %78 = vector.broadcast %77 : f32 to vector<1x1xf32>
      %79 = arith.addf %73, %78 : vector<1x1xf32>
      %cst_39 = arith.constant 2.400000e+01 : f32
      %80 = vector.broadcast %cst_39 : f32 to vector<1x1xf32>
      %81 = arith.divf %79, %80 : vector<1x1xf32>
      %c0_40 = arith.constant 0 : index
      %c0_41 = arith.constant 0 : index
      %82 = vector.load %arg5[%c0_40, %c0_41] : memref<1x1xf32, #tpu.memory_space<vmem>>, vector<1x1xf32>
      tpu.vector_store %arg5[%c0_40, %c0_41], %81 {strides = array<i32>} : memref<1x1xf32, #tpu.memory_space<vmem>>, vector<1x1xf32>,
    } else {
    }
    return
  }
  func.func @transform_0(%arg0: i32) -> (i32, i32) {
    %c0_i32 = arith.constant 0 : i32
    %c0_i32_0 = arith.constant 0 : i32
    return %arg0, %c0_i32 : i32, i32
  }
  func.func @transform_1(%arg0: i32) -> (i32, i32) {
    %c0_i32 = arith.constant 0 : i32
    %c0_i32_0 = arith.constant 0 : i32
    %c0_i32_1 = arith.constant 0 : i32
    return %c0_i32, %c0_i32_0 : i32, i32
  }
  func.func @transform_2(%arg0: i32) -> (i32, i32) {
    %c0_i32 = arith.constant 0 : i32
    %c0_i32_0 = arith.constant 0 : i32
    return %arg0, %c0_i32 : i32, i32
  }
  func.func @transform_3(%arg0: i32) -> (i32, i32) {
    %c0_i32 = arith.constant 0 : i32
    %c0_i32_0 = arith.constant 0 : i32
    %c0_i32_1 = arith.constant 0 : i32
    return %c0_i32, %c0_i32_0 : i32, i32
  }
  func.func @transform_4(%arg0: i32) -> (i32, i32) {
    %c0_i32 = arith.constant 0 : i32
    %c0_i32_0 = arith.constant 0 : i32
    %c0_i32_1 = arith.constant 0 : i32
    return %c0_i32, %c0_i32_0 : i32, i32
  }
}

</mosaic_0001>

<bundles_post_ra>
// kernel: tpu_custom_call.1
= control target key start
LH: loop header
LB: loop body
LE: loop exit
PB: predicated region body
PF: predicated region fallthrough
CT: control target
= control target key end

     0   :  { %s938_s0 = inlined_call_operand.hbm [shape: bf16[12,128], index: 0, kind: input, shape index: {}]   ;;  %s939_s1 = inlined_call_operand.hbm [shape: bf16[12,128], index: 1, kind: input, shape index: {}]   ;;  %s940_s2 = inlined_call_operand.vmem [shape: bf16[12,128], index: 2, kind: input, shape index: {}]   ;;  %s941_s3 = inlined_call_operand.<no memory space> [shape: f32[1,1], index: 3, kind: input, shape index: {}]   ;;  %s942_s4 = inlined_call_operand.hbm [shape: f32[1,1], index: 4, kind: output, shape index: {}]  }
   0x1   :  { %9 = sst [smem:[#allocation5]] %s941_s3 }
   0x2   :  { %10 = vsyncpa [#allocation7], 0 }
   0x3   :  { %12 = vsyncpa [#allocation7 + $0x1], 0 }
   0x4   :  { %13 = vsyncpa [#allocation10], 0 }
   0x5   :  { %14 = vsyncpa [#allocation8], 0  ;;  %s754_s17 = smov 0   ;;  %s756_s18 = smov 0  }
   0x6   :  { %s758_s19 = smov 0   ;;  %s760_s20 = smov 0  }
   0x7 LB: > { %s773_s3 = sadd.s32 4294967295, %s715_s20   ;;  %p40_p0 = scmp.ne.s32.totalorder %s707_s18, %s703_s17  ;;  %s715_s20 = sphi %s760_s20, %s958_s20   ;;  %s711_s19 = sphi %s758_s19, %s957_s19   ;;  %s707_s18 = sphi %s756_s18, %s956_s18   ;;  %s703_s17 = sphi %s754_s17, %s955_s17  }
   0x8   : > { %p943_p1 = scmp.eq.s32.totalorder %s773_s3, 0  ;;  %p486_p2 = scmp.ge.s32.totalorder %s715_s20, 1 }
   0x9   : > { %p140_p3 = scmp.lt.s32.totalorder %s715_s20, 3  ;;  %s717_s23 = smov [#allocation9]  }
   0xa   : > { %p782_p5 = por %p943_p1, %p40_p0  ;;  %s152_s24 = sshll.u32 %s717_s23, 4  ;;  %s153_s24 = int_to_ptr.vmem [resolvable:$true] %s152_s24 }
   0xb   : > { %p786_p6 = pnand %p486_p2, %p140_p3  ;;  %s799_s26 = sadd.s32 1, %s715_s20  }
   0xc   : > { %s946_s21 = scalar_select %p782_p5, 1, 0 }
   0xd   : > { %s947_s22 = scalar_select %p786_p6, 1, 0 }
   0xe   : > { %p525_p7 = pneg %p786_p6  ;;  %s27_s27 = sadd.s32 1, %s711_s19 }
   0xf   : > { %s24_s28 = ssub.s32 %s715_s20, %s799_s26  ;;  %s589_s5 = scalar_lea.hbm %s939_s1, 128 }
  0x10   : > { %p794_p8 = pnand %p525_p7, %p943_p1  ;;  %p590_p9 = scmp.ne.s32.totalorder %s939_s1, %s589_s5 }
  0x11   : > { %p596_p13 = scmp.lt.u32.totalorder %s589_s5, %s939_s1 }
  0x12   : > { %p591_p10 = pneg %p794_p8 }
  0x14   : > { %p592_p11 = pnand %p591_p10, %p590_p9 }
  0x16   : > { %p593_p12 = pneg %p592_p11 }
  0x18   : > { %p598_p0 = pnand %p596_p13, %p593_p12 }
  0x1a   : > { %601 = shalt.err (!%p598_p0)
}
  0x1b   : > { %s602_s10 = scalar_lea.vmem %s153_s24, 128  ;;  %p610_p4 = scmp.lt.s32.totalorder %s153_s24, %s153_s24 }
  0x1c   : > { %p603_p2 = scmp.ne.s32.totalorder %s153_s24, %s602_s10  ;;  %p611_p1 = scmp.lt.s32.totalorder %s602_s10, %s602_s10 }
  0x1e   : > { %p605_p3 = pnand %p603_p2, %p591_p10  ;;  %p612_p5 = por %p611_p1, %p610_p4 }
  0x20   : > { %p606_p7 = pneg %p605_p3 }
  0x22   : > { %p613_p6 = pnand %p612_p5, %p606_p7 }
  0x24   : > { %616 = shalt.err (!%p613_p6)
}
  0x25   : > { %s718_s11 = smov 64   ;;  %s719_s12 = smov 4  }
  0x26   : > { %528 = dma.hbm_to_vmem [thread:$0]  (!%p794_p8), %s939_s1, 128, %s153_s24, [#allocation10], %s718_s11, %s718_s11, %s719_s12  }
  0x27   : > { %p25_p9 = scmp.eq.s32.totalorder %s24_s28, 0  ;;  %p34_p10 = scmp.ne.s32.totalorder %s711_s19, %s707_s18 }
  0x28   : > { %p35_p1 = scmp.eq.s32.totalorder %s715_s20, 0  ;;  %p534_p4 = scmp.lt.s32.totalorder %s715_s20, 2 }
  0x29   : > { %s825_s15 = scalar_select %p25_p9, %s711_s19, %s27_s27  }
  0x2a   : > { %p36_p5 = por %p35_p1, %p34_p10  ;;  %s169_s16 = sand.u32 1, %s711_s19  }
  0x2b   : > { %s489_s17 = sshll.u32 %s169_s16, 2  ;;  %s490_s23 = sshll.u32 %s715_s20, 6 }
  0x2c   : > { %s832_s5 = scalar_lea.hbm %s938_s0, %s490_s23  ;;  %s173_s24 = scalar_lea.vmem [#allocation6], %s489_s17 }
  0x2d   : > { %s180_s25 = sshll.u32 %s173_s24, 4  ;;  %p836_p6 = pnand %p534_p4, %p36_p5  ;;  %s834_s25 = int_to_ptr.vmem [resolvable:$true] %s180_s25 }
  0x2e   : > { %s170_s20 = scalar_lea.sflag [#allocation7], %s169_s16  ;;  %s617_s28 = scalar_lea.hbm %s832_s5, 64 }
  0x2f   : > { %p618_p8 = scmp.ne.s32.totalorder %s832_s5, %s617_s28  ;;  %p619_p11 = pneg %p836_p6 }
  0x30   : > { %s622_s8 = scalar_lea.hbm %s938_s0, 128  ;;  %p623_p0 = scmp.lt.u32.totalorder %s832_s5, %s938_s0 }
  0x31   : > { %p620_p12 = pnand %p619_p11, %p618_p8  ;;  %p624_p2 = scmp.lt.u32.totalorder %s622_s8, %s617_s28 }
  0x32   : > { %p626_p7 = scmp.lt.u32.totalorder %s617_s28, %s832_s5 }
  0x33   : > { %p621_p13 = pneg %p620_p12  ;;  %p625_p3 = por %p624_p2, %p623_p0 }
  0x35   : > { %p627_p9 = por %p626_p7, %p625_p3 }
  0x37   : > { %p628_p10 = pnand %p627_p9, %p621_p13 }
  0x39   : > { %631 = shalt.err (!%p628_p10)
}
  0x3a   : > { %s632_s11 = scalar_lea.vmem %s834_s25, 64  ;;  %s720_s12 = smov [#allocation6]  }
  0x3b   : > { %p633_p1 = scmp.ne.s32.totalorder %s834_s25, %s632_s11  ;;  %s637_s13 = sshll.u32 %s720_s12, 4  ;;  %s638_s13 = int_to_ptr.vmem [resolvable:$false] %s637_s13 }
  0x3c   : > { %s639_s14 = scalar_lea.vmem %s638_s13, 128  ;;  %p640_p8 = scmp.lt.s32.totalorder %s834_s25, %s638_s13 }
  0x3d   : > { %p635_p4 = pnand %p633_p1, %p619_p11  ;;  %p641_p12 = scmp.lt.s32.totalorder %s639_s14, %s632_s11 }
  0x3f   : > { %p636_p5 = pneg %p635_p4  ;;  %p642_p0 = por %p641_p12, %p640_p8 }
  0x41   : > { %p643_p2 = pnand %p642_p0, %p636_p5 }
  0x43   : > { %646 = shalt.err (!%p643_p2)
}
  0x44   : > { %532 = dma.hbm_to_vmem [thread:$0]  (!%p836_p6), %s832_s5, 64, %s834_s25, %s170_s20  }
  0x45   : > { %p950_p13 = scmp.ne.s32.totalorder %s947_s22, 0 }
  0x46   : > { %s198_s16 = sand.u32 (!%p950_p13), 1, %s707_s18   ;;  %p951_p11 = scmp.ne.s32.totalorder (!%p950_p13), %s946_s21, 0 }
  0x47   : > { %196 = sbr.rel (%p950_p13) target bundleno = 884 (0x374), region = 36  ;;  %s492_s17 = sshll.u32 (!%p950_p13), %s198_s16, 2 }
  0x48   : > { %s199_s23 = scalar_lea.sflag (!%p950_p13), [#allocation7], %s198_s16  ;;  %s202_s29 = scalar_lea.vmem (!%p950_p13), [#allocation6], %s492_s17 }
  0x4e   : > { %690 = dma.done.wait (%p951_p11), %s199_s23, 64  }
  0x4f   : > { %692 = vsyncadd (%p951_p11), %s199_s23, 4294967232  ;;  %p952_p3 = scmp.eq.s32.totalorder %s773_s3, 0 }
  0x51   : > { %694 = dma.done.wait (%p952_p3), [#allocation10], 128   ;;  %p953_p7 = pmov %p952_p3 }
  0x52   : > { %p230_p6 = scmp.lt.s32.totalorder %s773_s3, 1  ;;  %p954_p9 = scmp.ne.s32.totalorder %s773_s3, 0 }
  0x53   : > { %696 = vsyncadd (%p953_p7), [#allocation10], 4294967168  ;;  %vm239_vm0 = vcmask (!%p954_p9), 90112   ;;  %vm242_vm1 = vcmask (!%p954_p9), 7168   ;;  %v721_v0 = vmov (!%p954_p9), -inf   ;;  %v722_v1 = vmov (!%p954_p9), 0.0  }
  0x54   : > { %s231_s22 = scalar_select %p230_p6, %s773_s3, 1 }
  0x55   : > { %238 = sbr.rel (%p954_p9) target bundleno = 92 (0x5c), region = 48  ;;  %240 = vst.msk [vmem:[#allocation2] sm:$0x1] (!%p954_p9), %vm239_vm0, %v721_v0  ;;  %241 = vst.msk [vmem:[#allocation3] sm:$0x1] (!%p954_p9), %vm239_vm0, %v722_v1  ;;  %vm244_vm2 = vcmask (!%p954_p9), 0  }
  0x56   : > { %s494_s30 = sshll.u32 %s231_s22, 2  ;;  %243 = vst.msk [vmem:[#allocation4] sm:$0xff] (!%p954_p9), %vm242_vm1, %v722_v1 }
  0x57   : > { %s881_s25 = scalar_lea.vmem %s940_s2, %s494_s30  ;;  %245 = vst.msk [vmem:[#allocation11] sm:$0x1] (!%p954_p9), %vm244_vm2, %v722_v1 }
  0x5c PF: > { %v723_v2 = vmov 0.0   ;;  %v578_v3 = vld [vmem:[#allocation9] sm:$0x3f]   ;;  %vm724_vm3 = vmmov 0   ;;  %s246_s21 = sld [smem:[#allocation5]]  ;;  %v300_v9 = vlaneseq  ;;  %s497_s27 = sshll.u32 %s773_s3, 3 }
  0x5d   : > { %505 = vmatprep.subr.bf16.mxu0 %v723_v2  ;;  %507 = vmatprep.mubr.msk.bf16.mxu0 %vm724_vm3, %v723_v2  ;;  %v247_v4 = vld [vmem:[%s202_s29] sm:$0xf]  ;;  %v303_v11 = vstv %s497_s27  ;;  %vm306_vm5 = vcmask 97280   ;;  %v342_v25 = vld [vmem:[#allocation2] sm:$0x1]  ;;  %vm366_vm6 = vcmask 90112  }
  0x5e   : > { %506 = vmatpush3.bf16.xpose.msra.mxu0 %v578_v3  ;;  %v248_v5 = vunpack.c.l.bf16 %v247_v4  ;;  %v301_v10 = vshrl.u32 %v300_v9, 7  ;;  %v320_v35 = vld [vmem:[%s881_s25] sm:$0xf]  ;;  %vm330_vm7 = vcmask 7168   ;;  %p498_p10 = scmp.ne.s32.totalorder %s773_s3, 1 }
  0x5f   : > { %v321_v37 = vunpack.c.l.bf16 %v320_v35  ;;  %v344_v45 = vld [vmem:[#allocation3] sm:$0x1]  ;;  %v325_v61 = vld [vmem:[#allocation4] sm:$0xff]  ;;  %vm404_vm8 = vcmask (!%p498_p10), 0  }
  0x60   : > { %v886_v12 = vadd.s32 %v303_v11, %v301_v10  ;;  %v352_v26 = vsub.s32 0, %v301_v10 }
  0x62   : > { %v249_v6 = vstv %s246_s21  ;;  %vm305_vm4 = vcmp.lt.s32.totalorder %v886_v12, 12 }
  0x63   : > { %v250_v7 = vmul.f32 %v249_v6, %v248_v5 }
  0x65   : > { %v251_v8 = vpack.c.bf16 %v250_v7, %v250_v7 }
  0x67   : > { %508 = vmatmul.mubr.bf16.vlgmr.msra.gmra.mrb[0].mxu0 %v251_v8  ;;  %v319_v34 = vunpack.c.l.bf16 %v251_v8 }
  0x69   : > { %v322_v40 = vmul.f32 %v321_v37, %v319_v34 }
  0x6b   : > { %323 = vadd.xlane.f32.xlu1 %v322_v40 }
  0xf8   : > { %v324_v56 = vpop.xlane.xlu1 %323 }
  0xf9   : > { %v326_v59 = vmul.f32 2.0, %v324_v56 }
 0x13a   : > { %v294_v13 = vpop.f32.mrb[0].mxu0 }
 0x13b   : > { %v334_v14 = vsel %vm305_vm4, %v294_v13, -inf  ;;  %v509_v15 = vpop.f32.mrb[1].mxu0  ;;  %v307_v16 = vsel %vm306_vm5, %v294_v13, -inf }
 0x13c   : > { %v335_v17 = vsel %vm306_vm5, %v334_v14, -inf  ;;  %308 = vmax.xlane.f32.xlu0 %v307_v16  ;;  %v297_v18 = vpop.f32.mrb[2].mxu0 }
 0x13d   : > { %v336_v19 = vrot.slane %v335_v17, 4  ;;  %v510_v20 = vpop.f32.mrb[3].mxu0 }
 0x13f   : > { %v337_v21 = vmax.f32 %v335_v17, %v336_v19 }
 0x141   : > { %v338_v22 = vrot.slane %v337_v21, 2 }
 0x143   : > { %v339_v23 = vmax.f32 %v337_v21, %v338_v22 }
 0x145   : > { %v340_v24 = vrot.slane %v339_v23, 1 }
 0x147   : > { %v341_v27 = vmax.f32 %v339_v23, %v340_v24 }
 0x149   : > { %v343_v28 = vmax.f32 %v342_v25, %v341_v27 }
 0x14b   : > { %v353_v29 = vrot.slane %v343_v28, %v352_v26  ;;  %368 = vst.msk [vmem:[#allocation2] sm:$0x1] %vm366_vm6, %v343_v28  ;;  %v345_v32 = vsub.f32 %v342_v25, %v343_v28 }
 0x14d   : > { %v355_v30 = vsub.f32 %v334_v14, %v353_v29  ;;  %v346_v33 = vmul.f32 1.442695, %v345_v32 }
 0x14f   : > { %v356_v31 = vmul.f32 1.442695, %v355_v30 }
 0x151   : > { %579 = vpow2.f32 %v356_v31 }
 0x152   : > { %581 = vpow2.f32 %v346_v33  ;;  %v373_v5 = vld [vmem:[#allocation2] sm:$0x1] (!%p498_p10) }
 0x15b   : > { %v580_v36 = vpop.eup %579 }
 0x15c   : > { %v358_v38 = vsel %vm306_vm5, %v580_v36, 0.0  ;;  %v582_v44 = vpop.eup %581 }
 0x15d   : > { %v359_v39 = vrot.slane %v358_v38, 4  ;;  %v348_v47 = vmul.f32 %v582_v44, %v344_v45 }
 0x15f   : > { %v360_v41 = vadd.f32 %v359_v39, %v358_v38 }
 0x161   : > { %v361_v42 = vrot.slane %v360_v41, 2 }
 0x163   : > { %v362_v43 = vadd.f32 %v361_v42, %v360_v41 }
 0x165   : > { %v363_v46 = vrot.slane %v362_v43, 1 }
 0x167   : > { %v364_v48 = vadd.f32 %v363_v46, %v362_v43 }
 0x169   : > { %v365_v49 = vadd.f32 %v364_v48, %v348_v47 }
 0x16b   : > { %367 = vst.msk [vmem:[#allocation3] sm:$0x1] %vm366_vm6, %v365_v49 }
 0x172   : > { %v374_v2 = vld [vmem:[#allocation3] sm:$0x1] (!%p498_p10) }
 0x1c9   : > { %v309_v50 = vpop.xlane.xlu0 %308 }
 0x1ca   : > { %v310_v51 = vsub.f32 %v294_v13, %v309_v50 }
 0x1cc   : > { %v311_v52 = vmul.f32 1.442695, %v310_v51 }
 0x1ce   : > { %583 = vpow2.f32 %v311_v52 }
 0x1d8   : > { %v584_v53 = vpop.eup %583 }
 0x1d9   : > { %v313_v54 = vsel %vm306_vm5, %v584_v53, 0.0 }
 0x1da   : > { %314 = vadd.xlane.f32.xlu0 %v313_v54 }
 0x267   : > { %v315_v55 = vpop.xlane.xlu0 %314 }
 0x268   : > { %585 = vlog2.f32 %v315_v55 }
 0x269   : > { %587 = vlog2.f32 (!%p498_p10), %v374_v2 }
 0x272   : > { %v586_v57 = vpop.eup %585 }
 0x273   : > { %v317_v58 = vmul.f32 0.6931472, %v586_v57  ;;  %v588_v4 = vpop.eup (!%p498_p10), %587 }
 0x274   : > { %v376_v6 = vmul.f32 (!%p498_p10), 0.6931472, %v588_v4 }
 0x275   : > { %v318_v60 = vadd.f32 %v317_v58, %v309_v50 }
 0x276   : > { %372 = sbr.rel (%p498_p10) target bundleno = 859 (0x35b), region = 52  ;;  %v377_v7 = vadd.f32 (!%p498_p10), %v376_v6, %v373_v5 }
 0x277   : > { %v327_v62 = vsub.f32 %v318_v60, %v326_v59 }
 0x278   : > { %v390_v8 = vsel (!%p498_p10), %vm366_vm6, %v377_v7, 0.0 }
 0x279   : > { %v328_v63 = vsel %vm305_vm4, %v327_v62, 0.0 }
 0x27a   : > { %v329_v0 = vadd.f32 %v328_v63, %v325_v61 }
 0x27c   : > { %331 = vst.msk [vmem:[#allocation4] sm:$0xff] %vm330_vm7, %v329_v0 }
 0x283   : > { %v378_v1 = vld [vmem:[#allocation4] sm:$0xff] }
 0x284   : > { %v379_v3 = vsel %vm330_vm7, %v378_v1, 0.0 }
 0x285   : > { %380 = vadd.xlane.f32.xlu0 %v379_v3 }
 0x289   : > { %391 = vadd.xlane.f32.xlu0 %v390_v8 }
 0x312   : > { %v381_v9 = vpop.xlane.xlu0 %380 }
 0x313   : > { %v382_v10 = vrot.slane %v381_v9, 4 }
 0x315   : > { %v383_v11 = vadd.f32 %v382_v10, %v381_v9 }
 0x316   : > { %v392_v16 = vpop.xlane.xlu0 %391 }
 0x317   : > { %v384_v12 = vrot.slane %v383_v11, 2  ;;  %v393_v17 = vrot.slane %v392_v16, 4 }
 0x319   : > { %v385_v13 = vadd.f32 %v384_v12, %v383_v11  ;;  %v394_v18 = vadd.f32 %v393_v17, %v392_v16 }
 0x31b   : > { %v386_v14 = vrot.slane %v385_v13, 1  ;;  %v395_v19 = vrot.slane %v394_v18, 2 }
 0x31d   : > { %v387_v15 = vadd.f32 %v386_v14, %v385_v13  ;;  %v396_v20 = vadd.f32 %v395_v19, %v394_v18 }
 0x31f   : > { %511 = vpush %v387_v15  ;;  %v397_v21 = vrot.slane %v396_v20, 1 }
 0x321   : > { %v398_v22 = vadd.f32 %v397_v21, %v396_v20 }
 0x323   : > { %513 = vpush %v398_v22 }
 0x350   : > { %s512_s20 = spop %511 }
 0x351   : > { %v389_v23 = vstv %s512_s20 }
 0x354   : > { %s514_s28 = spop %513 }
 0x355   : > { %v400_v24 = vstv %s514_s28 }
 0x356   : > { %v401_v25 = vadd.f32 %v400_v24, %v389_v23 }
 0x358   : > { %v403_v26 = vmul.f32 0.041666668, %v401_v25 }
 0x35a   : > { %405 = vst.msk [vmem:[#allocation11] sm:$0x1] %vm404_vm8, %v403_v26 }
 0x35b PF: > { %p536_p1 = scmp.eq.s32.totalorder %s773_s3, 1  ;;  %s725_s6 = smov [#allocation11]  }
 0x35c   : > { %s413_s7 = sshll.u32 %s725_s6, 4  ;;  %s414_s7 = int_to_ptr.vmem [resolvable:$true] %s413_s7 }
 0x35d   : > { %s647_s8 = scalar_lea.vmem %s414_s7, 16  ;;  %s653_s9 = scalar_lea.vmem %s414_s7, 32 }
 0x35e   : > { %p648_p4 = scmp.ne.s32.totalorder %s414_s7, %s647_s8  ;;  %p654_p12 = scmp.lt.s32.totalorder %s414_s7, %s414_s7 }
 0x35f   : > { %p655_p0 = scmp.lt.s32.totalorder %s653_s9, %s647_s8 }
 0x360   : > { %p649_p5 = pnand %p648_p4, %p536_p1 }
 0x361   : > { %p656_p2 = por %p655_p0, %p654_p12 }
 0x362   : > { %p650_p8 = pneg %p649_p5 }
 0x364   : > { %p657_p13 = pnand %p656_p2, %p650_p8 }
 0x366   : > { %660 = shalt.err (!%p657_p13)
}
 0x367   : > { %s661_s12 = scalar_lea.hbm %s942_s4, 16 }
 0x368   : > { %p662_p11 = scmp.ne.s32.totalorder %s942_s4, %s661_s12  ;;  %p667_p6 = scmp.lt.u32.totalorder %s661_s12, %s942_s4 }
 0x36a   : > { %p663_p3 = pnand %p662_p11, %p536_p1 }
 0x36c   : > { %p664_p7 = pneg %p663_p3 }
 0x36e   : > { %p669_p9 = pnand %p667_p6, %p664_p7 }
 0x370   : > { %672 = shalt.err (!%p669_p9)
}
 0x371   : > { %522 = dma.vmem_to_hbm [thread:$0]  (%p536_p1), %s414_s7, 16, %s942_s4, [#allocation8]  }
 0x372   : > { %698 = dma.done.wait (%p536_p1), [#allocation8], 16  }
 0x373   : > { %700 = vsyncadd (%p536_p1), [#allocation8], 4294967280 }
 0x374 PF: > { %p17_p10 = scmp.ge.s32.totalorder %s799_s26, 4   ;;  %s955_s17 = smov %s707_s18 }
 0x375   : > { %s956_s18 = smov %s711_s19  ;;  %s957_s19 = smov %s825_s15 }
 0x376   : > { %s958_s20 = smov %s799_s26  ;;  %19 = sbr.rel (!%p17_p10) target bundleno = 7 (0x7), region = 88 }
 0x37d   :  { %426 = vsyncpa [#allocation7], 1 }
 0x37e   :  { %428 = vsyncpa [#allocation7 + $0x1], 1 }
 0x37f   :  { %429 = vsyncpa [#allocation10], 1 }
 0x380   :  { %430 = vsyncpa [#allocation8], 1 }
 0x381   :  { %432 = vsyncpa [#allocation8 + $0x1], 1 }

</bundles_post_ra>
